<compile_context>
chip_gen: v7x
topology: tpu7x:2x2x1
jax: 0.10.0
libtpu: 0.0.40
codegen_flags: <defaults>
</compile_context>

<pallas_src>
import functools

import jax
import jax.numpy as jnp
from jax.experimental import pallas as pl
from jax.experimental.pallas import tpu as pltpu


_LANE = 128
_SUBLANE = 8
_TC_CAP = 4096      # max lane-tile width  (elements)
_TR_CAP = 1024      # max sublane-tile height (elements)


# ----------------------------- sizing helpers ------------------------------

@functools.lru_cache(maxsize=1)
def _vmem_budget_bytes():
    """Generation-aware scoped-VMEM budget: 75% of physical, capped at 96 MiB."""
    cap = None
    try:
        cap = getattr(pltpu.get_tpu_info(), "vmem_capacity_bytes", None)
    except Exception:
        cap = None
    if not cap:
        cap = 64 * 1024 * 1024          # v7x per-core VMEM; safe lower bound
    return int(min(cap * 3 // 4, 96 * 1024 * 1024))


def _cdiv(a, b):
    return -(-a // b)


def _block_dim(dim, base, cap):
    """Legal block extent: a multiple of `base` (<= cap) or the full dim."""
    if dim <= base:
        return dim                       # full dim (always legal)
    cap = max(base, (cap // base) * base)
    if dim <= cap:
        return dim                       # full array dim is always legal
    return cap                           # ragged last block handled by cdiv grid


def _pick_tiles(rows, cols, itemsize, stream_factor, rows_only_parallel):
    """Byte-based tile sizing; guarantee >=2 row blocks for the 2 v7x TCs."""
    budget = _vmem_budget_bytes()
    cap_elems = max(_SUBLANE * _LANE, budget // (stream_factor * itemsize))
    tc = _block_dim(cols, _LANE, min(_TC_CAP, max(_LANE, cap_elems // _SUBLANE)))
    tr = _block_dim(rows, _SUBLANE, min(_TR_CAP, max(_SUBLANE, cap_elems // tc)))
    # If the row axis is the only way to shard across the two v7x TensorCores,
    # make sure it has at least two blocks (no effect on v5e/v6e correctness).
    need_split = rows_only_parallel or _cdiv(cols, tc) < 2
    if need_split and tr == rows and rows >= 2 * _SUBLANE:
        tr = max(_SUBLANE, (rows // 2 // _SUBLANE) * _SUBLANE)
    return tr, tc


def _fits_fused(shape, itemsize):
    """Conservative VMEM-residency check for the fused whole-array kernel."""
    n_elems = 1
    for d in shape:
        n_elems *= int(d)
    # input + output buffers (native dtype) + ~3 f32-sized temporaries
    return n_elems * (2 * itemsize + 12) <= _vmem_budget_bytes()


# ----------------------------- Pallas kernels ------------------------------

def _make_stats_kernel(cols, tc):
    """Per-row [sum(x), sum(x*x)] accumulated across the column grid axis."""
    need_mask = (cols % tc) != 0

    def kernel(x_ref, out_ref):
        j = pl.program_id(1)

        @pl.when(j == 0)
        def _():
            out_ref[...] = jnp.zeros_like(out_ref)

        x = x_ref[...].astype(jnp.float32)
        if need_mask:
            # ragged last column block: zero the out-of-bounds lanes so they
            # do not pollute the statistics.
            lane = jax.lax.broadcasted_iota(jnp.int32, x.shape, 1)
            x = jnp.where(j * tc + lane < cols, x, 0.0)
        s = jnp.sum(x, axis=1, keepdims=True)
        q = jnp.sum(x * x, axis=1, keepdims=True)
        out_ref[...] += jnp.concatenate([s, q], axis=1)

    return kernel


def _scale_shift_kernel(x_ref, p_ref, o_ref):
    """y = x * scale + shift; scale/shift packed as p[:, 0] / p[:, 1]."""
    x = x_ref[...].astype(jnp.float32)
    p = p_ref[...]
    o_ref[...] = (x * p[:, 0:1] + p[:, 1:2]).astype(o_ref.dtype)


def _make_fused_train_kernel(inv_count, eps):
    """Whole-array training kernel: stats -> scale/shift -> normalize."""

    def kernel(scal_ref, x_ref, p_ref, o_ref, mean_ref, sqr_ref):
        inv_n = scal_ref[0]                                         # 1 / count
        x = x_ref[...].astype(jnp.float32)                          # (N, C, HW)
        s = jnp.sum(x, axis=2, keepdims=True)                       # (N, C, 1)
        q = jnp.sum(x * x, axis=2, keepdims=True)                   # (N, C, 1)
        ch_mean = jnp.sum(s, axis=0, keepdims=True) * inv_count     # (1, C, 1)
        ch_sqr = jnp.sum(q, axis=0, keepdims=True) * inv_count      # (1, C, 1)
        mean_ref[...] = ch_mean
        sqr_ref[...] = ch_sqr
        p = p_ref[...]                                              # (1, C, 4)
        mean_b = (p[:, :, 0:1] + ch_mean) * inv_n
        sqr_b = (p[:, :, 1:2] + ch_sqr) * inv_n
        var_b = jnp.maximum(sqr_b - mean_b * mean_b, 0.0)
        inv_std = jax.lax.rsqrt(var_b + eps)
        scale = p[:, :, 2:3] * inv_std
        shift = p[:, :, 3:4] - mean_b * scale
        o_ref[...] = (x * scale + shift).astype(o_ref.dtype)

    return kernel


# ----------------------------- kernel wrappers ------------------------------

def pallas_channel_row_stats(x2d):
    """(rows, 2) f32 with per-row [sum(x), sum(x*x)]; x read from HBM once."""
    rows, cols = x2d.shape
    tr, tc = _pick_tiles(rows, cols, x2d.dtype.itemsize,
                         stream_factor=4, rows_only_parallel=True)
    grid = (_cdiv(rows, tr), _cdiv(cols, tc))
    return pl.pallas_call(
        _make_stats_kernel(cols, tc),
        out_shape=jax.ShapeDtypeStruct((rows, 2), jnp.float32),
        grid_spec=pltpu.PrefetchScalarGridSpec(
            num_scalar_prefetch=0,
            grid=grid,
            in_specs=[pl.BlockSpec((tr, tc), lambda i, j: (i, j))],
            out_specs=pl.BlockSpec((tr, 2), lambda i, j: (i, 0)),
        ),
        compiler_params=pltpu.CompilerParams(
            dimension_semantics=("parallel", "arbitrary"),
            vmem_limit_bytes=_vmem_budget_bytes()),
    )(x2d)


def pallas_scale_shift(x2d, params_rows):
    """y2d = x2d * params[:, 0] + params[:, 1], tiled over rows and lanes."""
    rows, cols = x2d.shape
    tr, tc = _pick_tiles(rows, cols, x2d.dtype.itemsize,
                         stream_factor=8, rows_only_parallel=False)
    grid = (_cdiv(rows, tr), _cdiv(cols, tc))
    return pl.pallas_call(
        _scale_shift_kernel,
        out_shape=jax.ShapeDtypeStruct((rows, cols), x2d.dtype),
        grid_spec=pltpu.PrefetchScalarGridSpec(
            num_scalar_prefetch=0,
            grid=grid,
            in_specs=[pl.BlockSpec((tr, tc), lambda i, j: (i, j)),
                      pl.BlockSpec((tr, 2), lambda i, j: (i, 0))],
            out_specs=pl.BlockSpec((tr, tc), lambda i, j: (i, j)),
        ),
        compiler_params=pltpu.CompilerParams(
            dimension_semantics=("parallel", "parallel"),
            vmem_limit_bytes=_vmem_budget_bytes()),
    )(x2d, params_rows)


def pallas_fused_train(x3d, base_sum, base_sqr, weight, bias, inv_n, eps):
    """Single-pass training step for VMEM-resident x (N, C, H*W)."""
    n_b, n_ch, hw = x3d.shape
    inv_count = 1.0 / float(n_b * hw)
    params = jnp.stack([base_sum, base_sqr, weight, bias],
                       axis=-1).astype(jnp.float32).reshape(1, n_ch, 4)
    scalars = jnp.array([inv_n], jnp.float32)
    y, ch_mean, ch_sqr = pl.pallas_call(
        _make_fused_train_kernel(inv_count, float(eps)),
        out_shape=(jax.ShapeDtypeStruct(x3d.shape, x3d.dtype),
                   jax.ShapeDtypeStruct((1, n_ch, 1), jnp.float32),
                   jax.ShapeDtypeStruct((1, n_ch, 1), jnp.float32)),
        in_specs=[pl.BlockSpec(memory_space=pltpu.MemorySpace.SMEM),
                  pl.BlockSpec(memory_space=pltpu.MemorySpace.VMEM),
                  pl.BlockSpec(memory_space=pltpu.MemorySpace.VMEM)],
        out_specs=(pl.BlockSpec(memory_space=pltpu.MemorySpace.VMEM),
                   pl.BlockSpec(memory_space=pltpu.MemorySpace.VMEM),
                   pl.BlockSpec(memory_space=pltpu.MemorySpace.VMEM)),
        compiler_params=pltpu.CompilerParams(
            vmem_limit_bytes=_vmem_budget_bytes()),
    )(scalars, x3d, params)
    return y, ch_mean.reshape(n_ch), ch_sqr.reshape(n_ch)


# ------------------------------ Module port ---------------------------------

class ExpNorm2d:
    """JAX/Pallas port of the PyTorch ExpNorm2d module (forward semantics)."""

    def __init__(self, num_features, eps=1e-05, momentum=0.1, affine=True,
                 batch_size=32, allow_fused=True):
        self.num_features = num_features
        self.eps = float(eps)
        self.momentum = float(momentum)
        self.affine = affine
        self.batch_size = batch_size
        self.allow_fused = allow_fused
        self.training = True
        self.weight = None
        self.bias = None
        self._fused_broken = False
        self.reset_parameters()

    def reset_parameters(self):
        f = self.num_features
        if self.affine:
            self.weight = jnp.ones((f,), jnp.float32)
            self.bias = jnp.zeros((f,), jnp.float32)
        else:
            self.weight = None
            self.bias = None
        self.running_mean = jnp.zeros((f,), jnp.float32)
        self.running_var = jnp.ones((f,), jnp.float32)
        self.batch_sum = jnp.zeros((f,), jnp.float32)
        self.batch_sqr_sum = jnp.zeros((f,), jnp.float32)
        # Integer counter (torch uses a float buffer; an int counter avoids the
        # float-equality hazard on the `== batch_size` EMA trigger).
        self.num_batches_tracked = 0
        self.gotcha = False

    def __call__(self, x):
        assert x.ndim == 4, (
            'The input should be 2D features, got dimension:{}'.format(x.shape))
        n_batch, n_ch, h, w = x.shape
        assert n_ch == self.num_features

        # TODO(synk): the EMA/counter/gotcha branches stay as host-side Python
        # state (mirrors the torch buffer updates); they are persistent module
        # state across calls and cannot live inside a kernel.
        if self.training:
            accumulate = self.num_batches_tracked < self.batch_size
            new_n = self.num_batches_tracked + 1 if accumulate else 1
            base_sum = (self.batch_sum if accumulate
                        else jnp.zeros_like(self.batch_sum))
            base_sqr = (self.batch_sqr_sum if accumulate
                        else jnp.zeros_like(self.batch_sqr_sum))
            if self.affine:
                w_vec, b_vec = self.weight, self.bias
            else:
                w_vec = jnp.ones((n_ch,), jnp.float32)
                b_vec = jnp.zeros((n_ch,), jnp.float32)

            y = None
            use_fused = (self.allow_fused and not self._fused_broken
                         and _fits_fused(x.shape, x.dtype.itemsize))
            if use_fused:
                try:
                    x3d = x.reshape(n_batch, n_ch, h * w)
                    y3d, ch_mean, ch_sqr = pallas_fused_train(
                        x3d, base_sum, base_sqr, w_vec, b_vec,
                        1.0 / float(new_n), self.eps)
                    y = y3d.reshape(n_batch, n_ch, h, w)
                except Exception:
                    # Robust fallback to the streaming two-pass path.
                    self._fused_broken = True
                    y = None

            if y is None:
                x2d = x.reshape(n_batch * n_ch, h * w)
                stats = pallas_channel_row_stats(x2d)          # (N*C, 2) f32
                denom = jnp.float32(n_batch * h * w)
                ch_mean = stats[:, 0].reshape(n_batch, n_ch).sum(axis=0) / denom
                ch_sqr = stats[:, 1].reshape(n_batch, n_ch).sum(axis=0) / denom

            # ----- streaming-buffer bookkeeping (tiny (C,) vectors) ---------
            self.batch_sum = base_sum + ch_mean
            self.batch_sqr_sum = base_sqr + ch_sqr
            self.num_batches_tracked = new_n

            mean_b = self.batch_sum / new_n if new_n > 1 else self.batch_sum
            sqr_b = (self.batch_sqr_sum / new_n if new_n > 1
                     else self.batch_sqr_sum)
            var_b = sqr_b - mean_b * mean_b

            if new_n == self.batch_size:
                if self.gotcha:
                    self.running_mean = ((1.0 - self.momentum) * self.running_mean
                                         + self.momentum * mean_b)
                    self.running_var = ((1.0 - self.momentum) * self.running_var
                                        + self.momentum * var_b)
                else:
                    self.running_mean = mean_b
                    self.running_var = var_b
                self.gotcha = True

            if y is not None:
                return y                  # fused path already normalized
            mean, var = mean_b, var_b
        else:
            n = self.num_batches_tracked
            mean_b = (self.batch_sum / n if n != 0
                      else jnp.zeros_like(self.batch_sum))
            sqr_b = (self.batch_sqr_sum / n if n != 0
                     else jnp.ones_like(self.batch_sqr_sum))
            var_b = sqr_b - mean_b * mean_b
            mean = self.running_mean if self.gotcha else mean_b
            var = self.running_var if self.gotcha else var_b

        # ----- fold mean/var/weight/bias into per-channel scale & shift ----
        var_safe = jnp.maximum(var, 0.0)   # guard float-cancellation negatives
        inv_std = jax.lax.rsqrt(var_safe + self.eps)
        if self.affine:
            scale = self.weight * inv_std
            shift = self.bias - mean * scale
        else:
            scale = inv_std
            shift = -mean * inv_std
        # Row r of x2d is (batch r // C, channel r % C): tile (C,) over N and
        # pack scale/shift into one (N*C, 2) operand (single small DMA/block).
        params_rows = jnp.stack([jnp.tile(scale.astype(jnp.float32), n_batch),
                                 jnp.tile(shift.astype(jnp.float32), n_batch)],
                                axis=-1)

        x2d = x.reshape(n_batch * n_ch, h * w)
        y2d = pallas_scale_shift(x2d, params_rows)
        return y2d.reshape(n_batch, n_ch, h, w)


# --------------------------------- demo -------------------------------------

if __name__ == "__main__":
    key = jax.random.PRNGKey(0)
    n_batch, n_ch, h, w = 2, 4, 16, 16
    k1, k2, k3, k4 = jax.random.split(key, 4)
    x1 = jax.random.normal(k1, (n_batch, n_ch, h, w), jnp.float32)
    x2 = 1.0 + 0.5 * jax.random.normal(k2, (n_batch, n_ch, h, w), jnp.float32)
    x3 = jax.random.normal(k3, (n_batch, n_ch, h, w), jnp.float32)

    def ref_first_call(x, eps):
        m = x.mean(axis=(0, 2, 3))
        v = jnp.square(x).mean(axis=(0, 2, 3)) - m * m
        return ((x - m[None, :, None, None])
                / jnp.sqrt(v[None, :, None, None] + eps))

    # --- training (fused single-pass path) ----------------------------------
    norm = ExpNorm2d(n_ch, batch_size=2)
    norm.training = True
    y1 = norm(x1)
    y2 = norm(x2)        # counter hits batch_size -> running stats assigned
    y1_ref = ref_first_call(x1, norm.eps)
    assert jnp.allclose(y1, y1_ref, atol=2e-4, rtol=2e-4), "fused training mismatch"

    # --- training (streaming two-pass path: stats + scale/shift kernels) ----
    norm_nf = ExpNorm2d(n_ch, batch_size=2, allow_fused=False)
    norm_nf.training = True
    y1_nf = norm_nf(x1)
    assert jnp.allclose(y1_nf, y1_ref, atol=2e-4, rtol=2e-4), "two-pass training mismatch"

    # --- eval (running statistics through the scale/shift kernel) -----------
    norm.training = False
    y3 = norm(x3)
    jax.block_until_ready(y3)
    rm = norm.running_mean[None, :, None, None]
    rv = norm.running_var[None, :, None, None]
    y3_ref = (x3 - rm) / jnp.sqrt(rv + norm.eps)
    assert jnp.allclose(y3, y3_ref, atol=2e-4, rtol=2e-4), "eval output mismatch"

    # --- odd shapes (not multiples of (8, 128)) ------------------------------
    x_odd = jax.random.normal(k4, (2, 3, 10, 10), jnp.float32)
    y_odd_ref = ref_first_call(x_odd, 1e-5)

    norm_odd = ExpNorm2d(3, batch_size=2)
    norm_odd.training = True
    y_odd = norm_odd(x_odd)
    assert jnp.allclose(y_odd, y_odd_ref, atol=2e-4, rtol=2e-4), "odd-shape mismatch"

    norm_odd_nf = ExpNorm2d(3, batch_size=2, allow_fused=False)
    norm_odd_nf.training = True
    y_odd_nf = norm_odd_nf(x_odd)
    assert jnp.allclose(y_odd_nf, y_odd_ref, atol=2e-4, rtol=2e-4), \
        "odd-shape two-pass mismatch"

    for t in (y1, y2, y1_nf, y3, y_odd, y_odd_nf):
        jax.block_until_ready(t)
        assert t.shape == (t.shape[0], t.shape[1], t.shape[2], t.shape[3])
        assert bool(jnp.all(jnp.isfinite(t)))
    print("KERNEL_OK")
</pallas_src>

<mosaic_0001>
module attributes {stable_mosaic.version = 11 : i64} {
  func.func @kernel(%arg0: memref<1xf32, #tpu.memory_space<smem>>, %arg1: memref<2x4x256xf32, #tpu.memory_space<vmem>>, %arg2: memref<1x4x4xf32, #tpu.memory_space<vmem>>, %arg3: memref<2x4x256xf32, #tpu.memory_space<vmem>>, %arg4: memref<1x4x1xf32, #tpu.memory_space<vmem>>, %arg5: memref<1x4x1xf32, #tpu.memory_space<vmem>>) attributes {dimension_semantics = [], scalar_prefetch = 0 : i64, scratch_operands = 0 : i64, tpu.core_type = #tpu.core_type<tc>} {
    %c0 = arith.constant 0 : index
    %0 = memref.load %arg0[%c0] : memref<1xf32, #tpu.memory_space<smem>>
    %c0_0 = arith.constant 0 : index
    %c0_1 = arith.constant 0 : index
    %c0_2 = arith.constant 0 : index
    %1 = vector.load %arg1[%c0_0, %c0_1, %c0_2] : memref<2x4x256xf32, #tpu.memory_space<vmem>>, vector<2x4x256xf32>
    %cst = arith.constant dense<0.000000e+00> : vector<2x4xf32>
    %2 = vector.multi_reduction <add>, %1, %cst [2] : vector<2x4x256xf32> to vector<2x4xf32>
    %3 = vector.shape_cast %2 : vector<2x4xf32> to vector<2x4x1xf32>
    %4 = arith.mulf %1, %1 : vector<2x4x256xf32>
    %cst_3 = arith.constant dense<0.000000e+00> : vector<2x4xf32>
    %5 = vector.multi_reduction <add>, %4, %cst_3 [2] : vector<2x4x256xf32> to vector<2x4xf32>
    %6 = vector.shape_cast %5 : vector<2x4xf32> to vector<2x4x1xf32>
    %cst_4 = arith.constant dense<0.000000e+00> : vector<4x1xf32>
    %7 = vector.multi_reduction <add>, %3, %cst_4 [0] : vector<2x4x1xf32> to vector<4x1xf32>
    %8 = vector.shape_cast %7 : vector<4x1xf32> to vector<1x4x1xf32>
    %cst_5 = arith.constant 0.001953125 : f32
    %9 = vector.broadcast %cst_5 : f32 to vector<1x4x1xf32>
    %10 = arith.mulf %8, %9 : vector<1x4x1xf32>
    %cst_6 = arith.constant dense<0.000000e+00> : vector<4x1xf32>
    %11 = vector.multi_reduction <add>, %6, %cst_6 [0] : vector<2x4x1xf32> to vector<4x1xf32>
    %12 = vector.shape_cast %11 : vector<4x1xf32> to vector<1x4x1xf32>
    %cst_7 = arith.constant 0.001953125 : f32
    %13 = vector.broadcast %cst_7 : f32 to vector<1x4x1xf32>
    %14 = arith.mulf %12, %13 : vector<1x4x1xf32>
    %c0_8 = arith.constant 0 : index
    %c0_9 = arith.constant 0 : index
    %c0_10 = arith.constant 0 : index
    %15 = vector.load %arg4[%c0_8, %c0_9, %c0_10] : memref<1x4x1xf32, #tpu.memory_space<vmem>>, vector<1x4x1xf32>
    tpu.vector_store %arg4[%c0_8, %c0_9, %c0_10], %10 {strides = array<i32>} : memref<1x4x1xf32, #tpu.memory_space<vmem>>, vector<1x4x1xf32>,
    %c0_11 = arith.constant 0 : index
    %c0_12 = arith.constant 0 : index
    %c0_13 = arith.constant 0 : index
    %16 = vector.load %arg5[%c0_11, %c0_12, %c0_13] : memref<1x4x1xf32, #tpu.memory_space<vmem>>, vector<1x4x1xf32>
    tpu.vector_store %arg5[%c0_11, %c0_12, %c0_13], %14 {strides = array<i32>} : memref<1x4x1xf32, #tpu.memory_space<vmem>>, vector<1x4x1xf32>,
    %c0_14 = arith.constant 0 : index
    %c0_15 = arith.constant 0 : index
    %c0_16 = arith.constant 0 : index
    %17 = vector.load %arg2[%c0_14, %c0_15, %c0_16] : memref<1x4x4xf32, #tpu.memory_space<vmem>>, vector<1x4x4xf32>
    %18 = vector.extract_strided_slice %17 {offsets = [0, 0, 0], sizes = [1, 4, 1], strides = [1, 1, 1]} : vector<1x4x4xf32> to vector<1x4x1xf32>
    %19 = arith.addf %18, %10 : vector<1x4x1xf32>
    %20 = vector.broadcast %0 : f32 to vector<1x4x1xf32>
    %21 = arith.mulf %19, %20 : vector<1x4x1xf32>
    %22 = vector.extract_strided_slice %17 {offsets = [0, 0, 1], sizes = [1, 4, 1], strides = [1, 1, 1]} : vector<1x4x4xf32> to vector<1x4x1xf32>
    %23 = arith.addf %22, %14 : vector<1x4x1xf32>
    %24 = vector.broadcast %0 : f32 to vector<1x4x1xf32>
    %25 = arith.mulf %23, %24 : vector<1x4x1xf32>
    %26 = arith.mulf %21, %21 : vector<1x4x1xf32>
    %27 = arith.subf %25, %26 : vector<1x4x1xf32>
    %cst_17 = arith.constant 0.000000e+00 : f32
    %28 = vector.broadcast %cst_17 : f32 to vector<1x4x1xf32>
    %29 = arith.maximumf %27, %28 : vector<1x4x1xf32>
    %cst_18 = arith.constant 9.99999974E-6 : f32
    %30 = vector.broadcast %cst_18 : f32 to vector<1x4x1xf32>
    %31 = arith.addf %29, %30 : vector<1x4x1xf32>
    %32 = math.rsqrt %31 : vector<1x4x1xf32>
    %33 = vector.extract_strided_slice %17 {offsets = [0, 0, 2], sizes = [1, 4, 1], strides = [1, 1, 1]} : vector<1x4x4xf32> to vector<1x4x1xf32>
    %34 = arith.mulf %33, %32 : vector<1x4x1xf32>
    %35 = vector.extract_strided_slice %17 {offsets = [0, 0, 3], sizes = [1, 4, 1], strides = [1, 1, 1]} : vector<1x4x4xf32> to vector<1x4x1xf32>
    %36 = arith.mulf %21, %34 : vector<1x4x1xf32>
    %37 = arith.subf %35, %36 : vector<1x4x1xf32>
    %38 = vector.broadcast %34 : vector<1x4x1xf32> to vector<2x4x256xf32>
    %39 = arith.mulf %1, %38 : vector<2x4x256xf32>
    %40 = vector.broadcast %37 : vector<1x4x1xf32> to vector<2x4x256xf32>
    %41 = arith.addf %39, %40 : vector<2x4x256xf32>
    %c0_19 = arith.constant 0 : index
    %c0_20 = arith.constant 0 : index
    %c0_21 = arith.constant 0 : index
    %42 = vector.load %arg3[%c0_19, %c0_20, %c0_21] : memref<2x4x256xf32, #tpu.memory_space<vmem>>, vector<2x4x256xf32>
    tpu.vector_store %arg3[%c0_19, %c0_20, %c0_21], %41 {strides = array<i32>} : memref<2x4x256xf32, #tpu.memory_space<vmem>>, vector<2x4x256xf32>,
    return
  }
}

module attributes {stable_mosaic.version = 11 : i64} {
  func.func @kernel(%arg0: i32, %arg1: i32, %arg2: memref<8x256xf32, #tpu.memory_space<vmem>>, %arg3: memref<8x2xf32, #tpu.memory_space<vmem>>) attributes {dimension_semantics = [#tpu.dimension_semantics<parallel>, #tpu.dimension_semantics<arbitrary>], iteration_bounds = array<i64: 1, 1>, scalar_prefetch = 0 : i64, scratch_operands = 0 : i64, tpu.core_type = #tpu.core_type<tc>, window_params = [{transform_indices = @transform_0, window_bounds = array<i64: 8, 256>}, {transform_indices = @transform_1, window_bounds = array<i64: 8, 2>}]} {
    %c0_i32 = arith.constant 0 : i32
    %0 = arith.cmpi eq, %arg1, %c0_i32 : i32
    %1 = arith.extui %0 : i1 to i32
    %c0_i32_0 = arith.constant 0 : i32
    %2 = arith.cmpi ne, %1, %c0_i32_0 : i32
    scf.if %2 {
      %cst_7 = arith.constant 0.000000e+00 : f32
      %13 = vector.broadcast %cst_7 : f32 to vector<8x2xf32>
      %c0_8 = arith.constant 0 : index
      %c0_9 = arith.constant 0 : index
      %14 = vector.load %arg3[%c0_8, %c0_9] : memref<8x2xf32, #tpu.memory_space<vmem>>, vector<8x2xf32>
      tpu.vector_store %arg3[%c0_8, %c0_9], %13 {strides = array<i32>} : memref<8x2xf32, #tpu.memory_space<vmem>>, vector<8x2xf32>,
    } else {
    }
    %c0 = arith.constant 0 : index
    %c0_1 = arith.constant 0 : index
    %3 = vector.load %arg2[%c0, %c0_1] : memref<8x256xf32, #tpu.memory_space<vmem>>, vector<8x256xf32>
    %cst = arith.constant dense<0.000000e+00> : vector<8xf32>
    %4 = vector.multi_reduction <add>, %3, %cst [1] : vector<8x256xf32> to vector<8xf32>
    %5 = vector.shape_cast %4 : vector<8xf32> to vector<8x1xf32>
    %6 = arith.mulf %3, %3 : vector<8x256xf32>
    %cst_2 = arith.constant dense<0.000000e+00> : vector<8xf32>
    %7 = vector.multi_reduction <add>, %6, %cst_2 [1] : vector<8x256xf32> to vector<8xf32>
    %8 = vector.shape_cast %7 : vector<8xf32> to vector<8x1xf32>
    %c0_3 = arith.constant 0 : index
    %c0_4 = arith.constant 0 : index
    %9 = vector.load %arg3[%c0_3, %c0_4] : memref<8x2xf32, #tpu.memory_space<vmem>>, vector<8x2xf32>
    %10 = tpu.concatenate %5, %8 in 1 : vector<8x1xf32>, vector<8x1xf32> -> vector<8x2xf32>
    %11 = arith.addf %9, %10 : vector<8x2xf32>
    %c0_5 = arith.constant 0 : index
    %c0_6 = arith.constant 0 : index
    %12 = vector.load %arg3[%c0_5, %c0_6] : memref<8x2xf32, #tpu.memory_space<vmem>>, vector<8x2xf32>
    tpu.vector_store %arg3[%c0_5, %c0_6], %11 {strides = array<i32>} : memref<8x2xf32, #tpu.memory_space<vmem>>, vector<8x2xf32>,
    return
  }
  func.func @transform_0(%arg0: i32, %arg1: i32) -> (i32, i32) {
    %c0_i32 = arith.constant 0 : i32
    return %arg0, %arg1 : i32, i32
  }
  func.func @transform_1(%arg0: i32, %arg1: i32) -> (i32, i32) {
    %c0_i32 = arith.constant 0 : i32
    %c0_i32_0 = arith.constant 0 : i32
    return %arg0, %c0_i32 : i32, i32
  }
}

</mosaic_0001>

<bundles_post_ra>
// kernel: tpu_custom_call.1
= control target key start
LH: loop header
LB: loop body
LE: loop exit
PB: predicated region body
PF: predicated region fallthrough
CT: control target
= control target key end

     0   :  { %12 = vsyncpa [#allocation4], 0  ;;  %s341_s0 = inlined_call_operand.<no memory space> [shape: f32[1], index: 0, kind: input, shape index: {}]   ;;  %s342_s1 = inlined_call_operand.hbm [shape: f32[2,4,256], index: 1, kind: input, shape index: {}]   ;;  %s343_s2 = inlined_call_operand.vmem [shape: f32[1,4,4], index: 2, kind: input, shape index: {}]   ;;  %s344_s3 = inlined_call_operand.hbm [shape: f32[2,4,256], index: 3, kind: output, shape index: {0}]   ;;  %s345_s4 = inlined_call_operand.vmem [shape: f32[1,4,1], index: 4, kind: output, shape index: {1}]   ;;  %s346_s5 = inlined_call_operand.vmem [shape: f32[1,4,1], index: 5, kind: output, shape index: {2}]  }
   0x1   :  { %13 = vsyncpa [#allocation5], 0  ;;  %s231_s18 = smov [#allocation3]   ;;  %s183_s22 = scalar_lea.hbm %s342_s1, 256 }
   0x2   :  { %s21_s19 = sshll.u32 %s231_s18, 4  ;;  %p184_p0 = scmp.ne.s32.totalorder %s342_s1, %s183_s22  ;;  %s22_s19 = int_to_ptr.vmem [resolvable:$true] %s21_s19 }
   0x3   :  { %p187_p1 = scmp.lt.u32.totalorder %s183_s22, %s342_s1 }
   0x5   :  { %p189_p2 = pnand %p187_p1, %p184_p0 }
   0x7   :  { %192 = shalt.err (!%p189_p2)
}
   0x8   :  { %s193_s27 = scalar_lea.vmem %s22_s19, 256  ;;  %p198_p4 = scmp.lt.s32.totalorder %s22_s19, %s22_s19 }
   0x9   :  { %p194_p3 = scmp.ne.s32.totalorder %s22_s19, %s193_s27  ;;  %p199_p5 = scmp.lt.s32.totalorder %s193_s27, %s193_s27 }
   0xb   :  { %p200_p6 = por %p199_p5, %p198_p4 }
   0xd   :  { %p201_p7 = pnand %p200_p6, %p194_p3 }
   0xf   :  { %204 = shalt.err (!%p201_p7)
}
  0x10   :  { %s232_s28 = smov 128   ;;  %s233_s29 = smov 8  }
  0x11   :  { %27 = dma.hbm_to_vmem [thread:$0]  %s342_s1, 256, %s22_s19, [#allocation4], %s232_s28, %s232_s28, %s233_s29  }
  0x12   :  { %227 = dma.done.wait [#allocation4], 256  }
  0x13   :  { %228 = vsyncadd [#allocation4], 4294967040  ;;  %vm42_vm0 = vcmask 1043456   ;;  %v286_v0 = vld [vmem:[#allocation3] sm:$0xff]  ;;  %v288_v1 = vld [vmem:[#allocation3 + $0x8] sm:$0xff]  ;;  %vm79_vm1 = vcmask 3072   ;;  %v84_v31 = vstv %s341_s0  ;;  %v118_v54 = vlaneseq }
  0x14   :  { %v38_v2 = vcombine.high %v286_v0, %v286_v0  ;;  %v43_v3 = vsel %vm42_vm0, %v286_v0, 0.0  ;;  %v39_v4 = vcombine.high %v288_v1, %v288_v1  ;;  %v53_v5 = vmul.f32 %v286_v0, %v286_v0  ;;  %v82_v27 = vld [vmem:[%s343_s2] sm:$0xf]  ;;  %s234_s2 = smov 1   ;;  %s236_s0 = smov 126  }
  0x15   :  { %v54_v6 = vmul.f32 %v288_v1, %v288_v1  ;;  %v48_v8 = vsel %vm42_vm0, %v288_v1, 0.0  ;;  %v235_v43 = vmov 2   ;;  %v237_v47 = vmov 3  }
  0x16   :  { %v44_v7 = vsel %vm42_vm0, %v38_v2, 0.0  ;;  %v49_v9 = vsel %vm42_vm0, %v39_v4, 0.0  ;;  %v57_v11 = vcombine.high %v53_v5, %v53_v5  ;;  %v61_v12 = vsel %vm42_vm0, %v53_v5, 0.0  ;;  %176 = vset.pattern.permute.xlu0 %v235_v43  ;;  %177 = vset.pattern.permute.xlu1 %v237_v47 }
  0x17   :  { %v45_v10 = vadd.f32 %v44_v7, %v43_v3  ;;  %v58_v13 = vcombine.high %v54_v6, %v54_v6  ;;  %v50_v14 = vadd.f32 %v49_v9, %v48_v8  ;;  %v66_v16 = vsel %vm42_vm0, %v54_v6, 0.0 }
  0x18   :  { %v62_v15 = vsel %vm42_vm0, %v57_v11, 0.0  ;;  %v239_v52 = vmov 839922192   ;;  %v119_v56 = vshrl.u32 %v118_v54, 7 }
  0x19   :  { %46 = vadd.xlane.f32.xlu0 %v45_v10  ;;  %v63_v17 = vadd.f32 %v62_v15, %v61_v12  ;;  %v67_v18 = vsel %vm42_vm0, %v58_v13, 0.0  ;;  %v116_v53 = vunpack.c.l.s4 %v239_v52 }
  0x1a   :  { %v68_v19 = vadd.f32 %v67_v18, %v66_v16 }
  0x1b   :  { %64 = vadd.xlane.f32.xlu1 %v63_v17  ;;  %v117_v55 = vunpack.c.0.s8 %v116_v53 }
  0x1d   :  { %51 = vadd.xlane.f32.xlu0 %v50_v14  ;;  %v120_v57 = vsub.s32 %v117_v55, %v119_v56 }
  0x1f   :  { %69 = vadd.xlane.f32.xlu1 %v68_v19 }
  0xa6   :  { %v47_v20 = vpop.xlane.xlu0 %46 }
  0xa7   :  { %v71_v23 = vsel %vm42_vm0, %v47_v20, 0.0 }
  0xa8   :  { %v65_v21 = vpop.xlane.xlu1 %64 }
  0xa9   :  { %v75_v26 = vsel %vm42_vm0, %v65_v21, 0.0 }
  0xaa   :  { %v52_v22 = vpop.xlane.xlu0 %51 }
  0xab   :  { %v72_v24 = vsel %vm42_vm0, %v52_v22, 0.0 }
  0xac   :  { %v73_v25 = vadd.f32 %v72_v24, %v71_v23  ;;  %v70_v28 = vpop.xlane.xlu1 %69 }
  0xad   :  { %v76_v30 = vsel %vm42_vm0, %v70_v28, 0.0 }
  0xae   :  { %v74_v29 = vmul.f32 0.001953125, %v73_v25  ;;  %v77_v32 = vadd.f32 %v76_v30, %v75_v26 }
  0xb0   :  { %80 = vst.msk [vmem:[%s345_s4] sm:$0xf] %vm79_vm1, %v74_v29  ;;  %v83_v33 = vadd.f32 %v82_v27, %v74_v29  ;;  %v78_v34 = vmul.f32 0.001953125, %v77_v32  ;;  %s238_s4 = smov 3  }
  0xb2   :  { %v85_v35 = vmul.f32 %v84_v31, %v83_v33  ;;  %81 = vst.msk [vmem:[%s346_s5] sm:$0xf] %vm79_vm1, %v78_v34  ;;  %v86_v36 = vadd.f32 %v82_v27, %v78_v34  ;;  %s240_s5 = smov [#allocation6]  }
  0xb3   :  { %s146_s14 = sshll.u32 %s240_s5, 4  ;;  %s147_s14 = int_to_ptr.vmem [resolvable:$true] %s146_s14 }
  0xb4   :  { %v88_v37 = vmul.f32 %v85_v35, %v85_v35  ;;  %v87_v38 = vmul.f32 %v86_v36, %v84_v31  ;;  %s205_s15 = scalar_lea.vmem %s147_s14, 256  ;;  %p210_p9 = scmp.lt.s32.totalorder %s147_s14, %s147_s14 }
  0xb5   :  { %p206_p8 = scmp.ne.s32.totalorder %s147_s14, %s205_s15  ;;  %p211_p10 = scmp.lt.s32.totalorder %s205_s15, %s205_s15 }
  0xb6   :  { %90 = vrot.lane.b32.xlu0 %v88_v37, %s234_s2 }
  0xb7   :  { %p212_p11 = por %p211_p10, %p210_p9 }
  0xb9   :  { %p213_p12 = pnand %p212_p11, %p206_p8 }
 0x128   :  { %v91_v39 = vpop.permute.xlu0 %90 }
 0x129   :  { %v93_v40 = vsub.f32 %v87_v38, %v91_v39 }
 0x12b   :  { %v94_v41 = vmax.f32 %v93_v40, 0.0 }
 0x12d   :  { %v95_v42 = vadd.f32 1e-05, %v94_v41 }
 0x12f   :  { %181 = vrsqrt.f32 %v95_v42 }
 0x139   :  { %v182_v44 = vpop.eup %181 }
 0x13a   :  { %98 = vrot.lane.b32.xlu1 %v182_v44, %s234_s2 }
 0x1ac   :  { %v99_v45 = vpop.permute.xlu1 %98 }
 0x1ad   :  { %v101_v46 = vmul.f32 %v99_v45, %v82_v27 }
 0x1af   :  { %113 = vperm.xlu0 %176, %v101_v46   ;;  %103 = vrot.lane.b32.xlu1 %v101_v46, %s236_s0 }
 0x1b3   :  { %178 = vset.pattern.permute.xlu0 %v237_v47 }
 0x221   :  { %v104_v48 = vpop.permute.xlu1 %103 }
 0x222   :  { %v106_v49 = vmul.f32 %v104_v48, %v85_v35 }
 0x224   :  { %108 = vrot.lane.b32.xlu1 %v106_v49, %s238_s4 }
 0x22e   :  { %v114_v58 = vpop.permute.xlu0 %113 }
 0x22f   :  { %v121_v59 = vrot.slane %v114_v58, %v120_v57 }
 0x231   :  { %v123_v61 = vmul.f32 %v121_v59, %v286_v0  ;;  %v124_v62 = vmul.f32 %v121_v59, %v288_v1 }
 0x296   :  { %v109_v50 = vpop.permute.xlu1 %108 }
 0x297   :  { %v111_v51 = vsub.f32 %v82_v27, %v109_v50 }
 0x299   :  { %127 = vperm.xlu1 %177, %v111_v51  }
 0x318   :  { %v128_v60 = vpop.permute.xlu1 %127 }
 0x319   :  { %v135_v63 = vrot.slane %v128_v60, %v120_v57 }
 0x31b   :  { %v137_v2 = vadd.f32 %v135_v63, %v123_v61  ;;  %v138_v3 = vadd.f32 %v135_v63, %v124_v62 }
 0x31d   :  { %139 = vst [vmem:[#allocation6] sm:$0xff] %v137_v2  ;;  %140 = vst [vmem:[#allocation6 + $0x8] sm:$0xff] %v138_v3 }
 0x31e   :  { %216 = shalt.err (!%p213_p12)
}
 0x31f   :  { %s217_s18 = scalar_lea.hbm %s344_s3, 256 }
 0x320   :  { %p218_p13 = scmp.ne.s32.totalorder %s344_s3, %s217_s18  ;;  %p221_p0 = scmp.lt.u32.totalorder %s217_s18, %s344_s3 }
 0x322   :  { %p223_p1 = pnand %p221_p0, %p218_p13 }
 0x324   :  { %226 = shalt.err (!%p223_p1)
}
 0x325   :  { %152 = dma.vmem_to_hbm [thread:$0]  %s147_s14, 256, %s344_s3, [#allocation5], %s232_s28, %s232_s28, %s233_s29  }
 0x326   :  { %229 = dma.done.wait [#allocation5], 256  }
 0x327   :  { %230 = vsyncadd [#allocation5], 4294967040 }
 0x328   :  { %164 = vsyncpa [#allocation4], 1 }
 0x329   :  { %165 = vsyncpa [#allocation5], 1 }

// kernel: tpu_custom_call.1
= control target key start
LH: loop header
LB: loop body
LE: loop exit
PB: predicated region body
PF: predicated region fallthrough
CT: control target
= control target key end

     0   :  { %6 = vsyncpa [#allocation3], 0  ;;  %s73_s6 = smov [#allocation2]   ;;  %s108_s0 = inlined_call_operand.hbm [shape: f32[8,256], index: 0, kind: input, shape index: {}]   ;;  %s109_s1 = inlined_call_operand.vmem [shape: f32[8,2], index: 1, kind: output, shape index: {}]  }
   0x1   :  { %s13_s7 = sshll.u32 %s73_s6, 4  ;;  %s49_s10 = scalar_lea.hbm %s108_s0, 256  ;;  %s14_s7 = int_to_ptr.vmem [resolvable:$true] %s13_s7 }
   0x2   :  { %p50_p0 = scmp.ne.s32.totalorder %s108_s0, %s49_s10  ;;  %p53_p1 = scmp.lt.u32.totalorder %s49_s10, %s108_s0 }
   0x4   :  { %p55_p2 = pnand %p53_p1, %p50_p0 }
   0x6   :  { %58 = shalt.err (!%p55_p2)
}
   0x7   :  { %s59_s15 = scalar_lea.vmem %s14_s7, 256  ;;  %p64_p4 = scmp.lt.s32.totalorder %s14_s7, %s14_s7 }
   0x8   :  { %p60_p3 = scmp.ne.s32.totalorder %s14_s7, %s59_s15  ;;  %p65_p5 = scmp.lt.s32.totalorder %s59_s15, %s59_s15 }
   0xa   :  { %p66_p6 = por %p65_p5, %p64_p4 }
   0xc   :  { %p67_p7 = pnand %p66_p6, %p60_p3 }
   0xe   :  { %70 = shalt.err (!%p67_p7)
}
   0xf   :  { %16 = dma.hbm_to_vmem [thread:$0]  %s108_s0, 256, %s14_s7, [#allocation3]  }
  0x10   :  { %71 = dma.done.wait [#allocation3], 256  }
  0x11   :  { %72 = vsyncadd [#allocation3], 4294967040  ;;  %vm24_vm0 = vcmask 15360   ;;  %v74_v0 = vmov 0.0   ;;  %v26_v1 = vld [vmem:[#allocation2] sm:$0xff]  ;;  %v27_v2 = vld [vmem:[#allocation2 + $0x8] sm:$0xff] }
  0x12   :  { %25 = vst.msk [vmem:[%s109_s1] sm:$0xff] %vm24_vm0, %v74_v0  ;;  %v28_v3 = vadd.f32 %v27_v2, %v26_v1  ;;  %v31_v4 = vmul.f32 %v26_v1, %v26_v1  ;;  %v32_v5 = vmul.f32 %v27_v2, %v27_v2  ;;  %vm37_vm1 = vcmask 7168  }
  0x14   :  { %29 = vadd.xlane.f32.xlu0 %v28_v3  ;;  %v33_v6 = vadd.f32 %v32_v5, %v31_v4 }
  0x18   :  { %34 = vadd.xlane.f32.xlu0 %v33_v6 }
  0x19   :  { %v36_v8 = vld [vmem:[%s109_s1] sm:$0xff] }
  0xa1   :  { %v30_v7 = vpop.xlane.xlu0 %29 }
  0xa5   :  { %v35_v9 = vpop.xlane.xlu0 %34 }
  0xa6   :  { %v38_v10 = vsel %vm37_vm1, %v30_v7, %v35_v9 }
  0xa7   :  { %v39_v11 = vadd.f32 %v38_v10, %v36_v8 }
  0xa9   :  { %41 = vst.msk [vmem:[%s109_s1] sm:$0xff] %vm24_vm0, %v39_v11 }
  0xaa   :  { %46 = vsyncpa [#allocation3], 1 }

</bundles_post_ra>
